<compile_context>
chip_gen: v7x
topology: tpu7x:2x2x1
jax: 0.10.0
libtpu: 0.0.40
codegen_flags: <defaults>
</compile_context>

<pallas_src>
import functools

import jax
import jax.numpy as jnp
from jax.experimental import pallas as pl
from jax.experimental.pallas import tpu as pltpu

_LANES = 128


def _round_up(x, m):
    return ((x + m - 1) // m) * m


def _default_vmem_limit():
    # ~half of physical VMEM: 64 MiB on v5e/v6e (128 MiB), 32 MiB on v7x (64 MiB).
    try:
        cap = pltpu.get_tpu_info().vmem_capacity_bytes
    except Exception:
        cap = 64 * 1024 * 1024
    return int(min(max(cap // 2, 32 * 1024 * 1024), 96 * 1024 * 1024))


_VMEM_LIMIT = _default_vmem_limit()


# ----------------------------------------------------------------------------
# Conv (k=4, pad=1) as in-kernel tap accumulation over a phase-split input.
# Each grid step handles one batch element; the 16 taps are sliced from the
# resident phase block in VMEM (no im2col tensor in HBM).
# ----------------------------------------------------------------------------
def _conv_bias_act_kernel(x_ref, w_ref, b_ref, o_ref, *, stride, ho, wo, use_act):
    s = stride
    npad = o_ref.shape[-1]
    cin = x_ref.shape[-1]
    acc = jnp.zeros((ho * wo, npad), jnp.float32)
    for kh in range(4):
        for kw in range(4):
            p = (kh % s) * s + (kw % s)
            dh, dw = kh // s, kw // s
            xt = x_ref[p, pl.ds(dh, ho), pl.ds(dw, wo), :]
            acc += jnp.dot(xt.reshape(ho * wo, cin), w_ref[kh * 4 + kw],
                           preferred_element_type=jnp.float32)
    y = acc + b_ref[...]
    if use_act:
        y = jnp.where(y > 0, y, 0.2 * y)                 # LeakyReLU(0.2)
    o_ref[...] = y[None].astype(o_ref.dtype)


def _conv_stats_kernel(x_ref, w_ref, y_ref, s_ref, *, stride, ho, wo):
    # Pass 1 of two-pass BatchNorm: conv (no bias) + per-channel sum / sumsq
    # accumulated across the batch grid axis; y is stored in bf16.
    @pl.when(pl.program_id(0) == 0)
    def _():
        s_ref[...] = jnp.zeros_like(s_ref)

    s = stride
    npad = y_ref.shape[-1]
    cin = x_ref.shape[-1]
    acc = jnp.zeros((ho * wo, npad), jnp.float32)
    for kh in range(4):
        for kw in range(4):
            p = (kh % s) * s + (kw % s)
            dh, dw = kh // s, kw // s
            xt = x_ref[p, pl.ds(dh, ho), pl.ds(dw, wo), :]
            acc += jnp.dot(xt.reshape(ho * wo, cin), w_ref[kh * 4 + kw],
                           preferred_element_type=jnp.float32)
    y_ref[...] = acc[None].astype(y_ref.dtype)
    s_ref[...] += jnp.concatenate(
        [jnp.sum(acc, axis=0, keepdims=True),
         jnp.sum(acc * acc, axis=0, keepdims=True)], axis=0)


def _conv_matvec_kernel(x_ref, w_ref, b_ref, o_ref, *, stride, ho, wo):
    # Final Cout=1 conv as a VPU matvec (multiply + lane reduce), no N padding.
    s = stride
    cin = x_ref.shape[-1]
    acc = jnp.zeros((ho * wo, 1), jnp.float32)
    for kh in range(4):
        for kw in range(4):
            p = (kh % s) * s + (kw % s)
            dh, dw = kh // s, kw // s
            xt = x_ref[p, pl.ds(dh, ho), pl.ds(dw, wo), :]
            xt2 = xt.reshape(ho * wo, cin).astype(jnp.float32)
            acc += jnp.sum(xt2 * w_ref[kh * 4 + kw], axis=-1, keepdims=True)
    o_ref[...] = (acc + b_ref[...])[None].astype(o_ref.dtype)


def _bn_act_kernel(y_ref, s_ref, gb_ref, o_ref, *, inv_count, use_act):
    # Pass 2: apply BatchNorm (batch statistics, biased variance) + LeakyReLU.
    y = y_ref[0].astype(jnp.float32)              # (Mb, Np)
    st = s_ref[...]
    gb = gb_ref[...]
    mean = st[0:1, :] * inv_count
    var = jnp.maximum(st[1:2, :] * inv_count - mean * mean, 0.0)
    yn = (y - mean) * jax.lax.rsqrt(var + 1e-5)
    yn = yn * gb[0:1, :] + gb[1:2, :]
    if use_act:
        yn = jnp.where(yn > 0, yn, 0.2 * yn)
    o_ref[...] = yn[None].astype(o_ref.dtype)


def _conv_cost(batch, mb, cinp, npad, out_itemsize, phases):
    flops = 2 * batch * mb * 16 * cinp * npad
    bytes_accessed = (phases.size * phases.dtype.itemsize
                      + 16 * cinp * npad * 2
                      + batch * mb * npad * out_itemsize)
    return pl.CostEstimate(flops=int(flops), transcendentals=0,
                           bytes_accessed=int(bytes_accessed))


def _pallas_conv_bias_act(phases, wt, bias, batch, ss, hh, wh, stride, ho, wo,
                          use_act):
    cinp, npad = wt.shape[1], wt.shape[2]
    mb = ho * wo
    return pl.pallas_call(
        functools.partial(_conv_bias_act_kernel, stride=stride, ho=ho, wo=wo,
                          use_act=use_act),
        out_shape=jax.ShapeDtypeStruct((batch, mb, npad), jnp.bfloat16),
        grid=(batch,),
        in_specs=[pl.BlockSpec((ss, hh, wh, cinp), lambda b: (b, 0, 0, 0)),
                  pl.BlockSpec((16, cinp, npad), lambda b: (0, 0, 0)),
                  pl.BlockSpec((1, npad), lambda b: (0, 0))],
        out_specs=pl.BlockSpec((1, mb, npad), lambda b: (b, 0, 0)),
        compiler_params=pltpu.CompilerParams(
            dimension_semantics=("parallel",),
            vmem_limit_bytes=_VMEM_LIMIT),
        cost_estimate=_conv_cost(batch, mb, cinp, npad, 2, phases),
    )(phases, wt, bias)


def _pallas_conv_stats(phases, wt, batch, ss, hh, wh, stride, ho, wo):
    cinp, npad = wt.shape[1], wt.shape[2]
    mb = ho * wo
    return pl.pallas_call(
        functools.partial(_conv_stats_kernel, stride=stride, ho=ho, wo=wo),
        out_shape=(jax.ShapeDtypeStruct((batch, mb, npad), jnp.bfloat16),
                   jax.ShapeDtypeStruct((2, npad), jnp.float32)),
        grid=(batch,),
        in_specs=[pl.BlockSpec((ss, hh, wh, cinp), lambda b: (b, 0, 0, 0)),
                  pl.BlockSpec((16, cinp, npad), lambda b: (0, 0, 0))],
        out_specs=(pl.BlockSpec((1, mb, npad), lambda b: (b, 0, 0)),
                   pl.BlockSpec((2, npad), lambda b: (0, 0))),   # accumulator
        compiler_params=pltpu.CompilerParams(
            dimension_semantics=("arbitrary",),      # stats accumulate over b
            vmem_limit_bytes=_VMEM_LIMIT),
        cost_estimate=_conv_cost(batch, mb, cinp, npad, 2, phases),
    )(phases, wt)


def _pallas_conv_matvec(phases, wv, bias, batch, ss, hh, wh, stride, ho, wo):
    cinp = wv.shape[2]
    mb = ho * wo
    return pl.pallas_call(
        functools.partial(_conv_matvec_kernel, stride=stride, ho=ho, wo=wo),
        out_shape=jax.ShapeDtypeStruct((batch, mb, 1), jnp.float32),
        grid=(batch,),
        in_specs=[pl.BlockSpec((ss, hh, wh, cinp), lambda b: (b, 0, 0, 0)),
                  pl.BlockSpec((16, 1, cinp), lambda b: (0, 0, 0)),
                  pl.BlockSpec((1, 1), lambda b: (0, 0))],
        out_specs=pl.BlockSpec((1, mb, 1), lambda b: (b, 0, 0)),
        compiler_params=pltpu.CompilerParams(
            dimension_semantics=("parallel",),
            vmem_limit_bytes=_VMEM_LIMIT),
        cost_estimate=_conv_cost(batch, mb, cinp, 1, 4, phases),
    )(phases, wv, bias)


def _pallas_bn_act(y, stats, gb, count, use_act):
    batch, mb, npad = y.shape
    return pl.pallas_call(
        functools.partial(_bn_act_kernel, inv_count=1.0 / count,
                          use_act=use_act),
        out_shape=jax.ShapeDtypeStruct((batch, mb, npad), jnp.bfloat16),
        grid=(batch,),
        in_specs=[pl.BlockSpec((1, mb, npad), lambda b: (b, 0, 0)),
                  pl.BlockSpec((2, npad), lambda b: (0, 0)),
                  pl.BlockSpec((2, npad), lambda b: (0, 0))],
        out_specs=pl.BlockSpec((1, mb, npad), lambda b: (b, 0, 0)),
        compiler_params=pltpu.CompilerParams(
            dimension_semantics=("parallel",),
            vmem_limit_bytes=_VMEM_LIMIT),
    )(y, stats, gb)


def conv2d_layer(x_nhwc, p):
    """Conv2d(k=4, pad=1) + optional BatchNorm(batch stats) + LeakyReLU, NHWC."""
    B, H, W, Cin = x_nhwc.shape
    s = p['stride']
    Ho = (H + 2 - 4) // s + 1
    Wo = (W + 2 - 4) // s + 1
    ss = s * s
    cinp = p['cinp']

    x = x_nhwc.astype(jnp.bfloat16)
    if Cin != cinp:                                   # only layer 0 (3 -> 8)
        x = jnp.pad(x, ((0, 0), (0, 0), (0, 0), (0, cinp - Cin)))
    xp = jnp.pad(x, ((0, 0), (1, 1), (1, 1), (0, 0)))

    # Phase split: total size == padded activation size (no im2col blow-up).
    if s == 1:
        phases = xp[:, None]
    else:
        phases = jnp.stack([xp[:, py::2, px::2, :]
                            for py in range(2) for px in range(2)], axis=1)
    Hh, Wh = phases.shape[2], phases.shape[3]
    phases = phases.reshape(B * ss, Hh, Wh, cinp)

    if p['kind'] == 'matvec':
        y = _pallas_conv_matvec(phases, p['wv'], p['bias'], B, ss, Hh, Wh,
                                s, Ho, Wo)
        return y.reshape(B, Ho, Wo, 1)                # f32 logits

    if p['use_bn']:
        y, stats = _pallas_conv_stats(phases, p['wt'], B, ss, Hh, Wh, s, Ho, Wo)
        y = _pallas_bn_act(y, stats, p['gb'], count=B * Ho * Wo,
                           use_act=p['use_act'])
    else:
        y = _pallas_conv_bias_act(phases, p['wt'], p['bias'], B, ss, Hh, Wh,
                                  s, Ho, Wo, use_act=p['use_act'])
    return y[:, :, :p['cout']].reshape(B, Ho, Wo, p['cout'])


# ----------------------------------------------------------------------------
# NLayerDiscriminator (PatchGAN) parameters and forward
# ----------------------------------------------------------------------------
def init_discriminator_params(key, input_nc=3, ndf=32, n_layers=3, out_ch=1):
    """weights_init: conv weight ~ N(0, 0.02); BN gamma ~ N(1, 0.02), beta = 0."""
    chans = [input_nc, ndf]
    for n in range(1, n_layers):
        chans.append(ndf * min(2 ** n, 8))
    chans.append(ndf * min(2 ** n_layers, 8))
    chans.append(out_ch)
    strides = [2] * n_layers + [1, 1]
    n_convs = len(strides)
    keys = jax.random.split(key, 2 * n_convs)

    params = []
    for i in range(n_convs):
        cin, cout = chans[i], chans[i + 1]
        has_bn = (0 < i < n_convs - 1)        # middle convs: BatchNorm, no bias
        is_last = (i == n_convs - 1)
        w = 0.02 * jax.random.normal(keys[2 * i], (cout, cin, 4, 4), jnp.float32)
        cinp = _round_up(cin, 8)
        p = dict(stride=strides[i], cin=cin, cout=cout, cinp=cinp,
                 use_bn=has_bn, use_act=(i < n_convs - 1),
                 kind='matvec' if (is_last and cout == 1) else 'gemm')
        if p['kind'] == 'matvec':
            wv = w.transpose(2, 3, 0, 1).reshape(16, cout, cin)   # (16,1,Cin)
            p['wv'] = jnp.pad(wv, ((0, 0), (0, 0), (0, cinp - cin)))
            p['bias'] = jnp.zeros((1, 1), jnp.float32)
        else:
            npad = _round_up(cout, _LANES)
            wt = w.transpose(2, 3, 1, 0).reshape(16, cin, cout)   # (16,Cin,Cout)
            wt = jnp.pad(wt, ((0, 0), (0, cinp - cin), (0, npad - cout)))
            p['wt'] = wt.astype(jnp.bfloat16)
            if has_bn:
                g = 1.0 + 0.02 * jax.random.normal(keys[2 * i + 1], (cout,),
                                                   jnp.float32)
                beta = jnp.zeros((cout,), jnp.float32)
                p['gb'] = jnp.stack(
                    [jnp.pad(g, (0, npad - cout), constant_values=1.0),
                     jnp.pad(beta, (0, npad - cout))], axis=0)
            else:
                p['bias'] = jnp.zeros((1, npad), jnp.float32)
        params.append(p)
    return params


def discriminator_forward(params, x_nchw):
    y = x_nchw.transpose(0, 2, 3, 1)          # single NCHW -> NHWC conversion
    for p in params:
        y = conv2d_layer(y, p)
    return y                                   # (B, Ho, Wo, 1) f32 logits


# ----------------------------------------------------------------------------
# Tiled loss-reduction kernels
# ----------------------------------------------------------------------------
def _to_tiles(x, max_rows=2048):
    """Flatten to a (rows, 128) layout; pad only when not already tile-aligned."""
    flat = x.reshape(-1).astype(jnp.float32)
    n = flat.shape[0]
    rows = _round_up(max(pl.cdiv(n, _LANES), 1), 8)
    if rows <= max_rows:
        tr = rows
    else:
        tr = max_rows
        rows = _round_up(rows, tr)
    total = rows * _LANES
    if total != n:
        flat = jnp.pad(flat, (0, total - n))
    return flat.reshape(rows, _LANES), n, tr


def _sum_abs_diff_kernel(a_ref, b_ref, o_ref):
    @pl.when(pl.program_id(0) == 0)
    def _():
        o_ref[...] = jnp.zeros_like(o_ref)
    o_ref[...] += jnp.sum(jnp.abs(a_ref[...] - b_ref[...]), keepdims=True)


def pallas_mean_abs_diff(a, b):
    a2, n, tr = _to_tiles(a)
    b2, _, _ = _to_tiles(b)
    out = pl.pallas_call(
        _sum_abs_diff_kernel,
        out_shape=jax.ShapeDtypeStruct((1, 1), jnp.float32),
        grid=(a2.shape[0] // tr,),
        in_specs=[pl.BlockSpec((tr, _LANES), lambda i: (i, 0)),
                  pl.BlockSpec((tr, _LANES), lambda i: (i, 0))],
        out_specs=pl.BlockSpec((1, 1), lambda i: (0, 0)),
        compiler_params=pltpu.CompilerParams(
            dimension_semantics=("arbitrary",),
            vmem_limit_bytes=_VMEM_LIMIT),
    )(a2, b2)
    return out[0, 0] / n


def _sum_kernel(a_ref, o_ref):
    @pl.when(pl.program_id(0) == 0)
    def _():
        o_ref[...] = jnp.zeros_like(o_ref)
    o_ref[...] += jnp.sum(a_ref[...], keepdims=True)


def pallas_mean(a):
    a2, n, tr = _to_tiles(a)
    out = pl.pallas_call(
        _sum_kernel,
        out_shape=jax.ShapeDtypeStruct((1, 1), jnp.float32),
        grid=(a2.shape[0] // tr,),
        in_specs=[pl.BlockSpec((tr, _LANES), lambda i: (i, 0))],
        out_specs=pl.BlockSpec((1, 1), lambda i: (0, 0)),
        compiler_params=pltpu.CompilerParams(
            dimension_semantics=("arbitrary",),
            vmem_limit_bytes=_VMEM_LIMIT),
    )(a2)
    return out[0, 0] / n


def _disc_loss_kernel(lr_ref, lf_ref, o_ref, *, n_valid):
    # Fused: sum(relu(1-lr)), sum(relu(1+lf)), sum(lr), sum(lf).
    i = pl.program_id(0)

    @pl.when(i == 0)
    def _():
        o_ref[...] = jnp.zeros_like(o_ref)

    tr, c = lr_ref.shape
    ridx = jax.lax.broadcasted_iota(jnp.int32, (tr, c), 0) + i * tr
    cidx = jax.lax.broadcasted_iota(jnp.int32, (tr, c), 1)
    mask = (ridx * c + cidx) < n_valid

    lr = lr_ref[...]
    lf = lf_ref[...]
    zero = jnp.zeros((tr, c), jnp.float32)
    hr = jnp.where(mask, jnp.maximum(1.0 - lr, 0.0), zero)
    hf = jnp.where(mask, jnp.maximum(1.0 + lf, 0.0), zero)

    s0 = jnp.sum(hr, keepdims=True)
    s1 = jnp.sum(hf, keepdims=True)
    s2 = jnp.sum(lr, keepdims=True)          # zero-padded -> unbiased sum
    s3 = jnp.sum(lf, keepdims=True)
    o_ref[...] += jnp.concatenate([s0, s1, s2, s3], axis=1)


def pallas_hinge_d_loss_and_means(logits_real, logits_fake):
    lr2, n, tr = _to_tiles(logits_real)
    lf2, _, _ = _to_tiles(logits_fake)
    out = pl.pallas_call(
        functools.partial(_disc_loss_kernel, n_valid=n),
        out_shape=jax.ShapeDtypeStruct((1, 4), jnp.float32),
        grid=(lr2.shape[0] // tr,),
        in_specs=[pl.BlockSpec((tr, _LANES), lambda i: (i, 0)),
                  pl.BlockSpec((tr, _LANES), lambda i: (i, 0))],
        out_specs=pl.BlockSpec((1, 4), lambda i: (0, 0)),
        compiler_params=pltpu.CompilerParams(
            dimension_semantics=("arbitrary",),
            vmem_limit_bytes=_VMEM_LIMIT),
    )(lr2, lf2)
    d_loss = 0.5 * (out[0, 0] + out[0, 1]) / n
    return d_loss, out[0, 2] / n, out[0, 3] / n


# ----------------------------------------------------------------------------
# VQLPIPSWithDiscriminator.forward (label=None, hinge loss paths)
# ----------------------------------------------------------------------------
def adopt_weight(weight, global_step, threshold=0, value=0.0):
    return jnp.where(jnp.asarray(global_step) < threshold, value, weight)


def vq_lpips_with_discriminator_forward(
        disc_params, codebook_loss, inputs, reconstructions, optimizer_idx,
        global_step, disc_start, codebook_weight=1.0, disc_factor=1.0,
        split='train'):
    # rec_loss = |x - xhat|; nll_loss = mean(rec_loss)
    nll_loss = pallas_mean_abs_diff(inputs, reconstructions)
    rec_loss_mean = nll_loss
    d_factor = adopt_weight(disc_factor, global_step, threshold=disc_start)

    # TODO(synk): label-conditioned cross-entropy branch, vanilla (softplus)
    # d-loss and calculate_adaptive_weight (needs autograd through last_layer)
    # are not implemented; only the label=None hinge forward paths are here.
    if optimizer_idx == 0:
        logits_fake = discriminator_forward(disc_params, reconstructions)
        g_loss = -pallas_mean(logits_fake)
        cb_mean = jnp.mean(codebook_loss)
        loss = nll_loss + d_factor * g_loss + codebook_weight * cb_mean
        log = {f'{split}/total_loss': loss,
               f'{split}/quant_loss': cb_mean,
               f'{split}/nll_loss': nll_loss,
               f'{split}/rec_loss': rec_loss_mean,
               f'{split}/disc_factor': d_factor.astype(jnp.float32),
               f'{split}/g_loss': g_loss}
        return loss, log

    if optimizer_idx == 1:
        # Two separate discriminator passes so BatchNorm batch statistics stay
        # identical to the PyTorch reference (do NOT concat inputs/recons).
        logits_real = discriminator_forward(disc_params, inputs)
        logits_fake = discriminator_forward(disc_params, reconstructions)
        hinge, lr_mean, lf_mean = pallas_hinge_d_loss_and_means(
            logits_real, logits_fake)
        d_loss = d_factor * hinge
        log = {f'{split}/disc_loss': d_loss,
               f'{split}/logits_real': lr_mean,
               f'{split}/logits_fake': lf_mean}
        return d_loss, log

    raise ValueError("optimizer_idx must be 0 or 1")


# ----------------------------------------------------------------------------
if __name__ == "__main__":
    key = jax.random.PRNGKey(0)
    k1, k2, k3, k4 = jax.random.split(key, 4)

    # spatial must be >= 32 so the five k=4 convs (3 stride-2 + 2 stride-1) fit.
    inputs = jax.random.normal(k1, (2, 3, 32, 32), jnp.float32)
    reconstructions = jax.random.normal(k2, (2, 3, 32, 32), jnp.float32)
    codebook_loss = jnp.abs(jax.random.normal(k3, (), jnp.float32))

    disc_params = init_discriminator_params(k4, input_nc=3, ndf=32,
                                            n_layers=3, out_ch=1)

    # Generator-side loss (optimizer_idx=0)
    loss_g, log_g = vq_lpips_with_discriminator_forward(
        disc_params, codebook_loss, inputs, reconstructions,
        optimizer_idx=0, global_step=10000, disc_start=0)

    # Discriminator-side loss (optimizer_idx=1, hinge)
    loss_d, log_d = vq_lpips_with_discriminator_forward(
        disc_params, codebook_loss, inputs, reconstructions,
        optimizer_idx=1, global_step=10000, disc_start=0)

    jax.block_until_ready((loss_g, loss_d, log_g, log_d))
    print("KERNEL_OK")
</pallas_src>

<mosaic_0001>
module attributes {stable_mosaic.version = 11 : i64} {
  func.func @_sum_abs_diff_kernel(%arg0: i32, %arg1: memref<48x128xf32, #tpu.memory_space<vmem>>, %arg2: memref<48x128xf32, #tpu.memory_space<vmem>>, %arg3: memref<1x1xf32, #tpu.memory_space<vmem>>) attributes {dimension_semantics = [#tpu.dimension_semantics<arbitrary>], iteration_bounds = array<i64: 1>, scalar_prefetch = 0 : i64, scratch_operands = 0 : i64, tpu.core_type = #tpu.core_type<tc>, window_params = [{transform_indices = @transform_0, window_bounds = array<i64: 48, 128>}, {transform_indices = @transform_1, window_bounds = array<i64: 48, 128>}, {pipeline_mode = #tpu.pipeline_mode<synchronous>, transform_indices = @transform_2, window_bounds = array<i64: 1, 1>}]} {
    %c0_i32 = arith.constant 0 : i32
    %0 = arith.cmpi eq, %arg0, %c0_i32 : i32
    %1 = arith.extui %0 : i1 to i32
    %c0_i32_0 = arith.constant 0 : i32
    %2 = arith.cmpi ne, %1, %c0_i32_0 : i32
    scf.if %2 {
      %cst_8 = arith.constant 0.000000e+00 : f32
      %15 = vector.broadcast %cst_8 : f32 to vector<1x1xf32>
      %c0_9 = arith.constant 0 : index
      %c0_10 = arith.constant 0 : index
      %16 = vector.load %arg3[%c0_9, %c0_10] : memref<1x1xf32, #tpu.memory_space<vmem>>, vector<1x1xf32>
      tpu.vector_store %arg3[%c0_9, %c0_10], %15 {strides = array<i32>} : memref<1x1xf32, #tpu.memory_space<vmem>>, vector<1x1xf32>,
    } else {
    }
    %c0 = arith.constant 0 : index
    %c0_1 = arith.constant 0 : index
    %3 = vector.load %arg3[%c0, %c0_1] : memref<1x1xf32, #tpu.memory_space<vmem>>, vector<1x1xf32>
    %c0_2 = arith.constant 0 : index
    %c0_3 = arith.constant 0 : index
    %4 = vector.load %arg1[%c0_2, %c0_3] : memref<48x128xf32, #tpu.memory_space<vmem>>, vector<48x128xf32>
    %c0_4 = arith.constant 0 : index
    %c0_5 = arith.constant 0 : index
    %5 = vector.load %arg2[%c0_4, %c0_5] : memref<48x128xf32, #tpu.memory_space<vmem>>, vector<48x128xf32>
    %6 = arith.subf %4, %5 : vector<48x128xf32>
    %7 = math.absf %6 : vector<48x128xf32>
    %8 = vector.shape_cast %7 : vector<48x128xf32> to vector<1x48x128xf32>
    %cst = arith.constant dense<0.000000e+00> : vector<1xf32>
    %9 = vector.multi_reduction <add>, %8, %cst [1, 2] : vector<1x48x128xf32> to vector<1xf32>
    %10 = vector.shape_cast %9 : vector<1xf32> to vector<1x1x1xf32>
    %11 = vector.extract %10[0, 0, 0] : f32 from vector<1x1x1xf32>
    %12 = vector.broadcast %11 : f32 to vector<1x1xf32>
    %13 = arith.addf %3, %12 : vector<1x1xf32>
    %c0_6 = arith.constant 0 : index
    %c0_7 = arith.constant 0 : index
    %14 = vector.load %arg3[%c0_6, %c0_7] : memref<1x1xf32, #tpu.memory_space<vmem>>, vector<1x1xf32>
    tpu.vector_store %arg3[%c0_6, %c0_7], %13 {strides = array<i32>} : memref<1x1xf32, #tpu.memory_space<vmem>>, vector<1x1xf32>,
    return
  }
  func.func @transform_0(%arg0: i32) -> (i32, i32) {
    %c0_i32 = arith.constant 0 : i32
    %c0_i32_0 = arith.constant 0 : i32
    return %arg0, %c0_i32 : i32, i32
  }
  func.func @transform_1(%arg0: i32) -> (i32, i32) {
    %c0_i32 = arith.constant 0 : i32
    %c0_i32_0 = arith.constant 0 : i32
    return %arg0, %c0_i32 : i32, i32
  }
  func.func @transform_2(%arg0: i32) -> (i32, i32) {
    %c0_i32 = arith.constant 0 : i32
    %c0_i32_0 = arith.constant 0 : i32
    %c0_i32_1 = arith.constant 0 : i32
    return %c0_i32, %c0_i32_0 : i32, i32
  }
}

</mosaic_0001>

<bundles_post_ra>
// kernel: tpu_custom_call.1
= control target key start
LH: loop header
LB: loop body
LE: loop exit
PB: predicated region body
PF: predicated region fallthrough
CT: control target
= control target key end

     0   :  { %7 = vsyncpa [#allocation3], 0  ;;  %s244_s0 = inlined_call_operand.hbm [shape: f32[48,128], index: 0, kind: input, shape index: {}]   ;;  %s245_s1 = inlined_call_operand.hbm [shape: f32[48,128], index: 1, kind: input, shape index: {}]   ;;  %s246_s2 = inlined_call_operand.hbm [shape: f32[1,1], index: 2, kind: output, shape index: {}]  }
   0x1   :  { %8 = vsyncpa [#allocation6], 0 }
   0x2   :  { %9 = vsyncpa [#allocation4], 0  ;;  %s185_s9 = smov [#allocation2]   ;;  %s113_s13 = scalar_lea.hbm %s244_s0, 768 }
   0x3   :  { %s15_s10 = sshll.u32 %s185_s9, 4  ;;  %p114_p0 = scmp.ne.s32.totalorder %s244_s0, %s113_s13  ;;  %s16_s10 = int_to_ptr.vmem [resolvable:$true] %s15_s10 }
   0x4   :  { %p117_p1 = scmp.lt.u32.totalorder %s113_s13, %s244_s0 }
   0x6   :  { %p119_p2 = pnand %p117_p1, %p114_p0 }
   0x8   :  { %122 = shalt.err (!%p119_p2)
}
   0x9   :  { %s123_s18 = scalar_lea.vmem %s16_s10, 768  ;;  %p128_p4 = scmp.lt.s32.totalorder %s16_s10, %s16_s10 }
   0xa   :  { %p124_p3 = scmp.ne.s32.totalorder %s16_s10, %s123_s18  ;;  %p129_p5 = scmp.lt.s32.totalorder %s123_s18, %s123_s18 }
   0xc   :  { %p130_p6 = por %p129_p5, %p128_p4 }
   0xe   :  { %p131_p7 = pnand %p130_p6, %p124_p3 }
  0x10   :  { %134 = shalt.err (!%p131_p7)
}
  0x11   :  { %s186_s19 = smov 128   ;;  %s187_s20 = smov 8  }
  0x12   :  { %21 = dma.hbm_to_vmem [thread:$0]  %s244_s0, 768, %s16_s10, [#allocation3], %s186_s19, %s186_s19, %s187_s20  }
  0x13   :  { %s188_s23 = smov [#allocation5]   ;;  %s135_s27 = scalar_lea.hbm %s245_s1, 768 }
  0x14   :  { %s27_s24 = sshll.u32 %s188_s23, 4  ;;  %p136_p8 = scmp.ne.s32.totalorder %s245_s1, %s135_s27  ;;  %s28_s24 = int_to_ptr.vmem [resolvable:$true] %s27_s24 }
  0x15   :  { %p139_p9 = scmp.lt.u32.totalorder %s135_s27, %s245_s1 }
  0x17   :  { %p141_p10 = pnand %p139_p9, %p136_p8 }
  0x19   :  { %144 = shalt.err (!%p141_p10)
}
  0x1a   :  { %s145_s4 = scalar_lea.vmem %s28_s24, 768  ;;  %p150_p12 = scmp.lt.s32.totalorder %s28_s24, %s28_s24 }
  0x1b   :  { %p146_p11 = scmp.ne.s32.totalorder %s28_s24, %s145_s4  ;;  %p151_p13 = scmp.lt.s32.totalorder %s145_s4, %s145_s4 }
  0x1d   :  { %p152_p0 = por %p151_p13, %p150_p12 }
  0x1f   :  { %p153_p1 = pnand %p152_p0, %p146_p11 }
  0x21   :  { %156 = shalt.err (!%p153_p1)
}
  0x22   :  { %33 = dma.hbm_to_vmem [thread:$0]  %s245_s1, 768, %s28_s24, [#allocation6], %s186_s19, %s186_s19, %s187_s20  }
  0x23   :  { %179 = dma.done.wait [#allocation3], 768  }
  0x24   :  { %180 = vsyncadd [#allocation3], 4294966528 }
  0x25   :  { %181 = dma.done.wait [#allocation6], 768  }
  0x26   :  { %182 = vsyncadd [#allocation6], 4294966528  ;;  %v47_v0 = vld [vmem:[#allocation2] sm:$0xff]  ;;  %v48_v1 = vld [vmem:[#allocation2 + $0x8] sm:$0xff]  ;;  %vm44_vm0 = vcmask 0   ;;  %v189_v29 = vmov 0.0  }
  0x27   :  { %v49_v2 = vld [vmem:[#allocation2 + $0x10] sm:$0xff]  ;;  %v50_v3 = vld [vmem:[#allocation2 + $0x18] sm:$0xff]  ;;  %v51_v4 = vld [vmem:[#allocation2 + $0x20] sm:$0xff]  ;;  %45 = vst.msk [vmem:[#allocation7] sm:$0x1] %vm44_vm0, %v189_v29  ;;  %s190_s1 = smov [#allocation7]  }
  0x28   :  { %v53_v5 = vld [vmem:[#allocation5] sm:$0xff]  ;;  %v54_v6 = vld [vmem:[#allocation5 + $0x8] sm:$0xff]  ;;  %v55_v7 = vld [vmem:[#allocation5 + $0x10] sm:$0xff]  ;;  %s95_s6 = sshll.u32 %s190_s1, 4  ;;  %s96_s6 = int_to_ptr.vmem [resolvable:$true] %s95_s6 }
  0x29   :  { %v56_v8 = vld [vmem:[#allocation5 + $0x18] sm:$0xff]  ;;  %v57_v9 = vld [vmem:[#allocation5 + $0x20] sm:$0xff]  ;;  %v59_v10 = vsub.f32 %v47_v0, %v53_v5  ;;  %v60_v11 = vsub.f32 %v48_v1, %v54_v6  ;;  %v61_v12 = vsub.f32 %v49_v2, %v55_v7  ;;  %v58_v14 = vld [vmem:[#allocation5 + $0x28] sm:$0xff]  ;;  %s157_s8 = scalar_lea.vmem %s96_s6, 16  ;;  %s161_s9 = scalar_lea.vmem %s96_s6, 32 }
  0x2a   :  { %v52_v13 = vld [vmem:[#allocation2 + $0x28] sm:$0xff]  ;;  %v62_v15 = vsub.f32 %v50_v3, %v56_v8  ;;  %v63_v16 = vsub.f32 %v51_v4, %v57_v9  ;;  %p158_p2 = scmp.ne.s32.totalorder %s96_s6, %s157_s8  ;;  %p162_p3 = scmp.lt.s32.totalorder %s96_s6, %s96_s6 }
  0x2b   :  { %v65_v17 = vand.u32 2147483647, %v59_v10  ;;  %v66_v18 = vand.u32 2147483647, %v60_v11  ;;  %v67_v19 = vand.u32 2147483647, %v61_v12  ;;  %v64_v20 = vsub.f32 %v52_v13, %v58_v14  ;;  %p163_p4 = scmp.lt.s32.totalorder %s161_s9, %s157_s8 }
  0x2c   :  { %v68_v21 = vand.u32 2147483647, %v62_v15  ;;  %v69_v23 = vand.u32 2147483647, %v63_v16 }
  0x2d   :  { %v71_v22 = vadd.f32 %v66_v18, %v65_v17  ;;  %v70_v25 = vand.u32 2147483647, %v64_v20  ;;  %p164_p5 = por %p163_p4, %p162_p3 }
  0x2e   :  { %v46_v37 = vld [vmem:[#allocation7] sm:$0x1] }
  0x2f   :  { %v72_v24 = vadd.f32 %v71_v22, %v67_v19  ;;  %p165_p6 = pnand %p164_p5, %p158_p2 }
  0x31   :  { %v73_v26 = vadd.f32 %v72_v24, %v68_v21 }
  0x33   :  { %v74_v27 = vadd.f32 %v73_v26, %v69_v23 }
  0x35   :  { %v75_v28 = vadd.f32 %v74_v27, %v70_v25 }
  0x37   :  { %76 = vadd.xlane.f32.xlu0 %v75_v28 }
  0xc4   :  { %v77_v30 = vpop.xlane.xlu0 %76 }
  0xc5   :  { %v78_v31 = vrot.slane %v77_v30, 4 }
  0xc7   :  { %v79_v32 = vadd.f32 %v78_v31, %v77_v30 }
  0xc9   :  { %v80_v33 = vrot.slane %v79_v32, 2 }
  0xcb   :  { %v81_v34 = vadd.f32 %v80_v33, %v79_v32 }
  0xcd   :  { %v82_v35 = vrot.slane %v81_v34, 1 }
  0xcf   :  { %v83_v36 = vadd.f32 %v82_v35, %v81_v34 }
  0xd1   :  { %105 = vpush %v83_v36 }
 0x102   :  { %s106_s7 = spop %105 }
 0x103   :  { %v85_v38 = vstv %s106_s7 }
 0x104   :  { %v86_v39 = vadd.f32 %v85_v38, %v46_v37 }
 0x106   :  { %88 = vst.msk [vmem:[#allocation7] sm:$0x1] %vm44_vm0, %v86_v39 }
 0x107   :  { %168 = shalt.err (!%p165_p6)
}
 0x108   :  { %s169_s12 = scalar_lea.hbm %s246_s2, 16 }
 0x109   :  { %p170_p7 = scmp.ne.s32.totalorder %s246_s2, %s169_s12  ;;  %p173_p8 = scmp.lt.u32.totalorder %s169_s12, %s246_s2 }
 0x10b   :  { %p175_p9 = pnand %p173_p8, %p170_p7 }
 0x10d   :  { %178 = shalt.err (!%p175_p9)
}
 0x10e   :  { %98 = dma.vmem_to_hbm [thread:$0]  %s96_s6, 16, %s246_s2, [#allocation4]  }
 0x10f   :  { %183 = dma.done.wait [#allocation4], 16  }
 0x110   :  { %184 = vsyncadd [#allocation4], 4294967280 }
 0x111   :  { %102 = vsyncpa [#allocation3], 1 }
 0x112   :  { %103 = vsyncpa [#allocation6], 1 }
 0x113   :  { %104 = vsyncpa [#allocation4], 1 }

</bundles_post_ra>
